<compile_context>
chip_gen: v7x
topology: tpu7x:2x2x1
jax: 0.10.0
libtpu: 0.0.40
codegen_flags: <defaults>
</compile_context>

<pallas_src>
import functools
import numpy as np
import jax
import jax.numpy as jnp
from jax import lax
from jax.experimental import pallas as pl
from jax.experimental.pallas import tpu as pltpu


def make_kernel(k):
    """Same as the PyTorch make_kernel: outer product of a 1-D kernel, normalized."""
    k = np.asarray(k, dtype=np.float64)
    if k.ndim == 1:
        k = k[None, :] * k[:, None]
    k = k / k.sum()
    return k


def _hi_lo(a_f32):
    hi = a_f32.astype(jnp.bfloat16)
    lo = (a_f32 - hi.astype(jnp.float32)).astype(jnp.bfloat16)
    return hi, lo


def _fir_dot(data, m_hi, m_lo, *, data_on_left, split_data):
    """One FIR+decimation pass as MXU matmul(s), f32 accumulation.

    data:  activation operand (f32 or bf16/f16); hi/lo bf16-split when split_data so
           the native bf16 MXU passes retain ~f32 accuracy.
    m_hi:  banded decimation matrix (bf16).
    m_lo:  bf16 residual of the matrix (None when the taps are bf16-exact).
    """
    if split_data:
        d_parts = _hi_lo(data.astype(jnp.float32))
    else:
        d_parts = (data.astype(jnp.bfloat16),)

    def mm(a, b):
        if data_on_left:
            return jnp.dot(a, b, preferred_element_type=jnp.float32)
        return jnp.dot(b, a, preferred_element_type=jnp.float32)

    out = mm(d_parts[0], m_hi)
    for dp in d_parts[1:]:
        out = out + mm(dp, m_hi)
    if m_lo is not None:
        out = out + mm(d_parts[0], m_lo)      # lo*lo term (~2^-32) dropped
    return out


def _downsample_kernel(x_ref, dh_ref, dwt_ref, o_ref, t_ref, *,
                       hp, data_f32, mats_exact):
    """One grid step: `bsz` channels of (hp, wp) -> (h_out, w_out_pad).

    x_ref:   (bsz*hp, wp)         input tile, native dtype (channels stacked on rows)
    dh_ref:  (h_out, hp)          banded vertical FIR+decimation matrix
    dwt_ref: (wp, w_out_pad)      banded horizontal FIR+decimation matrix (transposed)
    o_ref:   (bsz, h_out, w_out_pad)
    t_ref:   (bsz*hp, w_out_pad)  f32 VMEM scratch for the W-pass intermediate
    """
    bsz = o_ref.shape[0]

    # Matrices: loaded once per grid step (constant block index -> no re-DMA); split
    # only when the taps were not exactly representable in bf16.
    if mats_exact:
        dwt_hi, dwt_lo = dwt_ref[...], None
        dh_hi, dh_lo = dh_ref[...], None
    else:
        dwt_hi, dwt_lo = _hi_lo(dwt_ref[...].astype(jnp.float32))
        dh_hi, dh_lo = _hi_lo(dh_ref[...].astype(jnp.float32))

    # ---- W pass, fused over all bsz channels: (bsz*hp, wp) @ (wp, w_out_pad) ----
    t_ref[...] = _fir_dot(x_ref[...], dwt_hi, dwt_lo,
                          data_on_left=True, split_data=data_f32)

    # ---- H pass, one full-height matmul per channel: (h_out, hp) @ (hp, w_out_pad) --
    def body(b, carry):
        r0 = pl.multiple_of(b * hp, 8)          # hp % 8 == 0 -> aligned sublane slice
        tb = t_ref[pl.ds(r0, hp), :]            # (hp, w_out_pad) f32
        out = _fir_dot(tb, dh_hi, dh_lo, data_on_left=False, split_data=data_f32)
        o_ref[b] = out.astype(o_ref.dtype)
        return carry

    lax.fori_loop(0, bsz, body, 0)


def downsample(x, kernel_1d=(1, 3, 3, 1), factor=2):
    """Equivalent of Downsample(kernel, factor).forward(x) with x in NCHW."""
    k1 = np.asarray(kernel_1d, dtype=np.float64)
    if k1.ndim != 1:
        # TODO(synk): non-separable 2-D FIR kernels need a per-tap (non-matmul) path.
        raise NotImplementedError("downsample expects a 1-D (separable) blur kernel")
    ktaps = int(k1.shape[0])
    down = int(factor)
    p = ktaps - down
    pad0, pad1 = (p + 1) // 2, p // 2

    n, c, h, w = x.shape
    # Zero-pad (crop if a pad is negative) in the *native* dtype -- no wrapper upcast.
    xp = jnp.pad(x, ((0, 0), (0, 0),
                     (max(pad0, 0), max(pad1, 0)),
                     (max(pad0, 0), max(pad1, 0))))
    if pad0 < 0 or pad1 < 0:
        xp = xp[:, :,
                max(-pad0, 0): xp.shape[2] - max(-pad1, 0),
                max(-pad0, 0): xp.shape[3] - max(-pad1, 0)]
    hp0, wp = int(xp.shape[2]), int(xp.shape[3])
    h_out = (hp0 - ktaps) // down + 1
    w_out = (wp - ktaps) // down + 1

    # Lane-dense output: pad w_out up to a multiple of 128 (crop in the wrapper) only
    # when it is already >= 128; tiny outputs stay unpadded.
    if w_out >= 128 and w_out % 128 != 0:
        w_out_pad = pl.cdiv(w_out, 128) * 128
    else:
        w_out_pad = w_out

    # Sublane-align the padded input height so the channel-fused (bsz*hp, wp) block and
    # the per-channel slices of the intermediate are layout-free.
    hp = pl.cdiv(hp0, 8) * 8

    # Separable flipped+normalized taps: out[m,l] = sum_ab k1f[a] k1f[b] xp[m*d+a, l*d+b].
    k1f = k1[::-1] / k1.sum()
    t32 = np.ascontiguousarray(k1f.astype(np.float32))
    mats_exact = bool(np.array_equal(t32.astype(np.float64), k1f)
                      and np.all((t32.view(np.uint32) & 0xFFFF) == 0))

    # Banded decimation matrices so that   out = Dh @ x_pad @ DwT   per channel.
    dh_np = np.zeros((h_out, hp), dtype=np.float64)
    for m in range(h_out):
        dh_np[m, m * down: m * down + ktaps] = k1f
    dwt_np = np.zeros((wp, w_out_pad), dtype=np.float64)
    for l in range(w_out):
        dwt_np[l * down: l * down + ktaps, l] = k1f
    mat_dtype = jnp.bfloat16 if mats_exact else jnp.float32
    dh = jnp.asarray(dh_np, dtype=mat_dtype)
    dwt = jnp.asarray(dwt_np, dtype=mat_dtype)

    nc = n * c
    x3 = xp.reshape(nc, hp0, wp)
    if hp != hp0:
        x3 = jnp.pad(x3, ((0, 0), (0, hp - hp0), (0, 0)))

    # ---- VMEM-budgeted channel batch + explicit vmem limit (per TPU generation) ----
    try:
        vmem_cap = int(getattr(pltpu.get_tpu_info(), "vmem_capacity_bytes", 64 << 20))
    except Exception:
        vmem_cap = 64 << 20                         # conservative (fits v7x)
    vmem_limit = min(int(vmem_cap * 0.85), 100 << 20)
    budget = min(int(vmem_cap * 0.60), 72 << 20)

    itemsize = int(np.dtype(x.dtype).itemsize)
    mat_bytes = 2 * (int(dh.size) + int(dwt.size)) * (2 if mats_exact else 4)
    per_chan = (2 * hp * wp * itemsize                   # input block (double-buffered)
                + 2 * h_out * w_out_pad * itemsize       # output block (double-buffered)
                + hp * w_out_pad * 4)                    # f32 intermediate scratch
    bsz = int(max(1, min(nc, (budget - mat_bytes) // max(per_chan, 1), 1024)))
    if nc >= 2 and pl.cdiv(nc, bsz) < 2:
        bsz = pl.cdiv(nc, 2)       # keep >= 2 grid steps so both v7x TensorCores get work
    nc_pad = pl.cdiv(nc, bsz) * bsz
    if nc_pad != nc:
        x3 = jnp.pad(x3, ((0, nc_pad - nc), (0, 0), (0, 0)))
    x2 = x3.reshape(nc_pad * hp, wp)   # channels stacked on the sublane axis (free in HBM)

    data_f32 = itemsize > 2
    kernel = functools.partial(_downsample_kernel, hp=hp,
                               data_f32=data_f32, mats_exact=mats_exact)
    out = pl.pallas_call(
        kernel,
        out_shape=jax.ShapeDtypeStruct((nc_pad, h_out, w_out_pad), x.dtype),
        grid=(nc_pad // bsz,),
        in_specs=[
            pl.BlockSpec((bsz * hp, wp), lambda i: (i, 0)),
            pl.BlockSpec((h_out, hp), lambda i: (0, 0)),
            pl.BlockSpec((wp, w_out_pad), lambda i: (0, 0)),
        ],
        out_specs=pl.BlockSpec((bsz, h_out, w_out_pad), lambda i: (i, 0, 0)),
        scratch_shapes=[pltpu.VMEM((bsz * hp, w_out_pad), jnp.float32)],
        compiler_params=pltpu.CompilerParams(
            dimension_semantics=("parallel",),
            vmem_limit_bytes=int(vmem_limit)),
    )(x2, dh, dwt)
    return out[:nc, :, :w_out].reshape(n, c, h_out, w_out)


def _reference_downsample_np(x, kernel_1d=(1, 3, 3, 1), factor=2):
    """Exact float64 numpy reference for upfirdn2d(x, make_kernel(k), up=1, down=factor)."""
    k = make_kernel(kernel_1d)                 # (K, K) float64
    kk = k.shape[0]
    p = kk - factor
    pad0, pad1 = (p + 1) // 2, p // 2
    xn = np.asarray(x, dtype=np.float64)
    xp = np.pad(xn, ((0, 0), (0, 0), (pad0, pad1), (pad0, pad1)))
    kflip = k[::-1, ::-1]
    _, _, hp, wp = xp.shape
    ho = (hp - kk) // factor + 1
    wo = (wp - kk) // factor + 1
    out = np.zeros(xn.shape[:2] + (ho, wo), dtype=np.float64)
    for a in range(kk):
        for b in range(kk):
            out += kflip[a, b] * xp[:, :, a: a + factor * ho: factor,
                                          b: b + factor * wo: factor]
    return out


if __name__ == "__main__":
    key = jax.random.PRNGKey(0)
    x = jax.random.normal(key, (2, 4, 16, 16), dtype=jnp.float32)

    out = downsample(x, kernel_1d=(1, 3, 3, 1), factor=2)
    out = jax.block_until_ready(out)
    assert out.shape == (2, 4, 8, 8), out.shape

    ref = _reference_downsample_np(np.asarray(x), (1, 3, 3, 1), 2)
    # hi/lo bf16 split keeps relative error ~2^-16, well inside 2e-4.
    np.testing.assert_allclose(np.asarray(out, dtype=np.float64), ref,
                               rtol=2e-4, atol=2e-4)

    # bf16 path: single matmul per pass (input precision dominates the error).
    out_bf16 = jax.block_until_ready(downsample(x.astype(jnp.bfloat16),
                                                kernel_1d=(1, 3, 3, 1), factor=2))
    np.testing.assert_allclose(np.asarray(out_bf16, dtype=np.float64), ref,
                               rtol=3e-2, atol=3e-2)

    print("KERNEL_OK")
</pallas_src>

<mosaic_0001>
module attributes {stable_mosaic.version = 11 : i64} {
  func.func @_downsample_kernel(%arg0: i32, %arg1: memref<96x18xf32, #tpu.memory_space<vmem>>, %arg2: memref<8x24xbf16, #tpu.memory_space<vmem>>, %arg3: memref<18x8xbf16, #tpu.memory_space<vmem>>, %arg4: memref<4x8x8xf32, #tpu.memory_space<vmem>>, %arg5: memref<96x8xf32, #tpu.memory_space<vmem>>) attributes {dimension_semantics = [#tpu.dimension_semantics<parallel>], iteration_bounds = array<i64: 2>, scalar_prefetch = 0 : i64, scratch_operands = 1 : i64, tpu.core_type = #tpu.core_type<tc>, window_params = [{transform_indices = @transform_0, window_bounds = array<i64: 96, 18>}, {pipeline_mode = #tpu.pipeline_mode<synchronous>, transform_indices = @transform_1, window_bounds = array<i64: 8, 24>}, {pipeline_mode = #tpu.pipeline_mode<synchronous>, transform_indices = @transform_2, window_bounds = array<i64: 18, 8>}, {transform_indices = @transform_3, window_bounds = array<i64: 4, 8, 8>}]} {
    %c0 = arith.constant 0 : index
    %c0_0 = arith.constant 0 : index
    %0 = vector.load %arg3[%c0, %c0_0] : memref<18x8xbf16, #tpu.memory_space<vmem>>, vector<18x8xbf16>
    %c0_1 = arith.constant 0 : index
    %c0_2 = arith.constant 0 : index
    %1 = vector.load %arg2[%c0_1, %c0_2] : memref<8x24xbf16, #tpu.memory_space<vmem>>, vector<8x24xbf16>
    %c0_3 = arith.constant 0 : index
    %c0_4 = arith.constant 0 : index
    %2 = vector.load %arg1[%c0_3, %c0_4] : memref<96x18xf32, #tpu.memory_space<vmem>>, vector<96x18xf32>
    %3 = arith.truncf %2 : vector<96x18xf32> to vector<96x18xbf16>
    %4 = arith.extf %3 : vector<96x18xbf16> to vector<96x18xf32>
    %5 = arith.subf %2, %4 : vector<96x18xf32>
    %6 = arith.truncf %5 : vector<96x18xf32> to vector<96x18xbf16>
    %cst = arith.constant dense<0.000000e+00> : vector<96x8xf32>
    %7 = tpu.matmul %3, %0, %cst {dimension_numbers = #tpu.dot_dimension_numbers<[1], [0], [0], [1], [0, 0, 1, 1], [], []>} : vector<96x18xbf16>, vector<18x8xbf16>, vector<96x8xf32> -> vector<96x8xf32>
    %cst_5 = arith.constant dense<0.000000e+00> : vector<96x8xf32>
    %8 = tpu.matmul %6, %0, %cst_5 {dimension_numbers = #tpu.dot_dimension_numbers<[1], [0], [0], [1], [0, 0, 1, 1], [], []>} : vector<96x18xbf16>, vector<18x8xbf16>, vector<96x8xf32> -> vector<96x8xf32>
    %9 = arith.addf %7, %8 : vector<96x8xf32>
    %c0_6 = arith.constant 0 : index
    %c0_7 = arith.constant 0 : index
    %10 = vector.load %arg5[%c0_6, %c0_7] : memref<96x8xf32, #tpu.memory_space<vmem>>, vector<96x8xf32>
    tpu.vector_store %arg5[%c0_6, %c0_7], %9 {strides = array<i32>} : memref<96x8xf32, #tpu.memory_space<vmem>>, vector<96x8xf32>,
    %c0_i32 = arith.constant 0 : i32
    %c4_i32 = arith.constant 4 : i32
    %11 = arith.addi %c0_i32, %c4_i32 : i32
    %c1_i32 = arith.constant 1 : i32
    scf.for %arg6 = %c0_i32 to %11 step %c1_i32  : i32 {
      %c24_i32 = arith.constant 24 : i32
      %12 = arith.muli %arg6, %c24_i32 : i32
      %13 = tpu.assume_multiple %12, 8 : i32
      %14 = arith.index_cast %13 : i32 to index
      %c0_9 = arith.constant 0 : index
      %15 = vector.load %arg5[%14, %c0_9] : memref<96x8xf32, #tpu.memory_space<vmem>>, vector<24x8xf32>
      %16 = arith.truncf %15 : vector<24x8xf32> to vector<24x8xbf16>
      %17 = arith.extf %16 : vector<24x8xbf16> to vector<24x8xf32>
      %18 = arith.subf %15, %17 : vector<24x8xf32>
      %19 = arith.truncf %18 : vector<24x8xf32> to vector<24x8xbf16>
      %cst_10 = arith.constant dense<0.000000e+00> : vector<8x8xf32>
      %20 = tpu.matmul %1, %16, %cst_10 {dimension_numbers = #tpu.dot_dimension_numbers<[1], [0], [0], [1], [0, 0, 1, 1], [], []>} : vector<8x24xbf16>, vector<24x8xbf16>, vector<8x8xf32> -> vector<8x8xf32>
      %cst_11 = arith.constant dense<0.000000e+00> : vector<8x8xf32>
      %21 = tpu.matmul %1, %19, %cst_11 {dimension_numbers = #tpu.dot_dimension_numbers<[1], [0], [0], [1], [0, 0, 1, 1], [], []>} : vector<8x24xbf16>, vector<24x8xbf16>, vector<8x8xf32> -> vector<8x8xf32>
      %22 = arith.addf %20, %21 : vector<8x8xf32>
      %23 = arith.index_cast %arg6 : i32 to index
      %c0_12 = arith.constant 0 : index
      %c0_13 = arith.constant 0 : index
      %24 = vector.load %arg4[%23, %c0_12, %c0_13] : memref<4x8x8xf32, #tpu.memory_space<vmem>>, vector<1x8x8xf32>
      %25 = vector.shape_cast %24 : vector<1x8x8xf32> to vector<8x8xf32>
      %26 = vector.shape_cast %22 : vector<8x8xf32> to vector<1x8x8xf32>
      tpu.vector_store %arg4[%23, %c0_12, %c0_13], %26 {strides = array<i32>} : memref<4x8x8xf32, #tpu.memory_space<vmem>>, vector<1x8x8xf32>,
    }
    %c4_i32_8 = arith.constant 4 : i32
    return
  }
  func.func @transform_0(%arg0: i32) -> (i32, i32) {
    %c0_i32 = arith.constant 0 : i32
    %c0_i32_0 = arith.constant 0 : i32
    return %arg0, %c0_i32 : i32, i32
  }
  func.func @transform_1(%arg0: i32) -> (i32, i32) {
    %c0_i32 = arith.constant 0 : i32
    %c0_i32_0 = arith.constant 0 : i32
    %c0_i32_1 = arith.constant 0 : i32
    return %c0_i32, %c0_i32_0 : i32, i32
  }
  func.func @transform_2(%arg0: i32) -> (i32, i32) {
    %c0_i32 = arith.constant 0 : i32
    %c0_i32_0 = arith.constant 0 : i32
    %c0_i32_1 = arith.constant 0 : i32
    return %c0_i32, %c0_i32_0 : i32, i32
  }
  func.func @transform_3(%arg0: i32) -> (i32, i32, i32) {
    %c0_i32 = arith.constant 0 : i32
    %c0_i32_0 = arith.constant 0 : i32
    %c0_i32_1 = arith.constant 0 : i32
    return %arg0, %c0_i32, %c0_i32_0 : i32, i32, i32
  }
}

</mosaic_0001>

<bundles_post_ra>
// kernel: tpu_custom_call.1
= control target key start
LH: loop header
LB: loop body
LE: loop exit
PB: predicated region body
PF: predicated region fallthrough
CT: control target
= control target key end

     0   :  { %8 = vsyncpa [#allocation4], 0  ;;  %s1091_s0 = inlined_call_operand.vmem [shape: f32[192,18], index: 0, kind: input, shape index: {}]   ;;  %s1092_s1 = inlined_call_operand.vmem [shape: bf16[8,24], index: 1, kind: input, shape index: {}]   ;;  %s1093_s2 = inlined_call_operand.vmem [shape: bf16[18,8], index: 2, kind: input, shape index: {}]   ;;  %s1094_s3 = inlined_call_operand.hbm [shape: f32[8,8,8], index: 3, kind: output, shape index: {}]  }
   0x1   :  { %10 = vsyncpa [#allocation4 + $0x1], 0  ;;  %s914_s12 = smov 0   ;;  %s916_s13 = smov 0  }
   0x2   :  { %s918_s14 = smov 0   ;;  %s920_s15 = smov 0  }
   0x3 LB: > { %s935_s16 = sadd.s32 4294967295, %s883_s15   ;;  %s650_s17 = sadd.s32 4294967294, %s883_s15   ;;  %s883_s15 = sphi %s920_s15, %s1100_s15   ;;  %s879_s14 = sphi %s918_s14, %s1099_s14   ;;  %s875_s13 = sphi %s916_s13, %s1098_s13   ;;  %s871_s12 = sphi %s914_s12, %s1097_s12  }
   0x4   : > { %s939_s18 = sadd.s32 1, %s883_s15   ;;  %s91_s19 = sadd.s32 1, %s879_s14 }
   0x5   : > { %s88_s20 = ssub.s32 %s883_s15, %s939_s18  ;;  %p101_p0 = scmp.ne.s32.totalorder %s879_s14, %s875_s13 }
   0x6   : > { %p89_p1 = scmp.eq.s32.totalorder %s88_s20, 0  ;;  %p102_p2 = scmp.eq.s32.totalorder %s935_s16, 1 }
   0x7   : > { %p107_p3 = scmp.ne.s32.totalorder %s875_s13, %s871_s12  ;;  %p108_p4 = scmp.eq.s32.totalorder %s650_s17, 1 }
   0x8   : > { %s950_s21 = scalar_select %p89_p1, %s879_s14, %s91_s19  }
   0x9   : > { %p952_p5 = por %p102_p2, %p101_p0  ;;  %p956_p6 = por %p108_p4, %p107_p3 }
   0xa   : > { %p653_p7 = scmp.ge.s32.totalorder %s883_s15, 1  ;;  %p141_p8 = scmp.lt.s32.totalorder %s883_s15, 3 }
   0xc   : > { %p142_p9 = pnand %p653_p7, %p141_p8 }
   0xd   : > { %v815_v0 = vld [vmem:[%s1093_s2] sm:$0xff] (!%p142_p9)   ;;  %s162_s26 = sand.u32 (!%p142_p9), 1, %s875_s13   ;;  %vm253_vm0 = vcmask (!%p142_p9), 1040384   ;;  %v816_v2 = vld [vmem:[%s1093_s2 + $0x8] ss:$0 sps:$4 sm:$0x11] (!%p142_p9)  }
   0xe   : > { %145 = sbr.rel (%p142_p9) target bundleno = 519 (0x207), region = 32  ;;  %s968_s27 = sshll.u32 (!%p142_p9), %s162_s26, 5  ;;  %v973_v1 = vld [vmem:[%s1092_s1] sm:$0xf] (!%p142_p9)  ;;  %717 = vmatprep.subr.bf16.mxu0 (!%p142_p9), %v815_v0  ;;  %701 = vmatprep.subr.bf16.mxu1 (!%p142_p9), %v815_v0  ;;  %v255_v3 = vsel (!%p142_p9), %vm253_vm0, %v816_v2, 0  ;;  %vm234_vm1 = vcmask (!%p142_p9), 146432  }
   0xf   : > { %s165_s5 = smul.u32 (!%p142_p9), 12, %s935_s16  ;;  %718 = vmatpush3.bf16.msra.mxu0 (!%p142_p9), %v815_v0  ;;  %702 = vmatpush3.bf16.msra.mxu1 (!%p142_p9), %v815_v0  ;;  %vm437_vm2 = vcmask (!%p142_p9), 64512   ;;  %s164_s10 = scalar_lea.vmem (!%p142_p9), [#allocation3], %s968_s27 }
  0x10   : > { %763 = vmatprep.subr.msk.bf16.mxu0 (!%p142_p9), %vm253_vm0, %v816_v2  ;;  %762 = vmatprep.subr.msk.bf16.mxu1 (!%p142_p9), %vm253_vm0, %v816_v2  ;;  %s1021_s11 = smov (!%p142_p9), 0  }
  0x11   : > { %p166_p10 = scmp.lt.s32.totalorder (!%p142_p9), %s165_s5, 23 }
  0x13   : > { %720 = vmatpush3.bf16.msra.mxu0 (!%p142_p9), %v255_v3  ;;  %704 = vmatpush3.bf16.msra.mxu1 (!%p142_p9), %v255_v3 }
  0x15   : > { %s1102_s5 = smov (!%p166_p10, %s165_s5), 23 }
  0x16   : > { %s655_s6 = sshll.u32 %s1102_s5, 3 }
  0x17   : > { %s982_s9 = scalar_lea.vmem %s1091_s0, %s655_s6 }
  0x18   : > { %v177_v4 = vld [vmem:[%s982_s9] sm:$0xff]  ;;  %v178_v5 = vld [vmem:[%s982_s9 + $0x8] sm:$0xff]  ;;  %v179_v6 = vld [vmem:[%s982_s9 + $0x10] sm:$0xff] }
  0x19   : > { %v189_v7 = vpack.c.bf16 %v178_v5, %v177_v4  ;;  %v180_v8 = vld [vmem:[%s982_s9 + $0x18] sm:$0xff]  ;;  %v181_v9 = vld [vmem:[%s982_s9 + $0x20] sm:$0xff]  ;;  %v182_v10 = vld [vmem:[%s982_s9 + $0x28] sm:$0xff] }
  0x1a   : > { %v190_v11 = vpack.c.bf16 %v180_v8, %v179_v6  ;;  %v191_v12 = vpack.c.bf16 %v182_v10, %v181_v9  ;;  %v183_v13 = vld [vmem:[%s982_s9 + $0x30] sm:$0xff]  ;;  %v184_v14 = vld [vmem:[%s982_s9 + $0x38] sm:$0xff]  ;;  %v185_v22 = vld [vmem:[%s982_s9 + $0x40] sm:$0xff] }
  0x1b   : > { %721 = vmatprep.mubr.msk.bf16.mxu0 %vm234_vm1, %v189_v7  ;;  %v195_v15 = vunpack.c.l.bf16 %v189_v7  ;;  %v196_v16 = vunpack.c.h.bf16 %v189_v7  ;;  %v192_v17 = vpack.c.bf16 %v184_v14, %v183_v13  ;;  %v186_v23 = vld [vmem:[%s982_s9 + $0x48] sm:$0xff]  ;;  %v187_v34 = vld [vmem:[%s982_s9 + $0x50] sm:$0xff]  ;;  %v188_v35 = vld [vmem:[%s982_s9 + $0x58] sm:$0xff] }
  0x1c   : > { %722 = vmatmul.mubr.msk.bf16.vlgmr.msra.gmra.mrb[0].mxu0 %vm234_vm1, %v190_v11  ;;  %v197_v18 = vunpack.c.l.bf16 %v190_v11  ;;  %v198_v19 = vunpack.c.h.bf16 %v190_v11  ;;  %v199_v20 = vunpack.c.l.bf16 %v191_v12  ;;  %v200_v21 = vunpack.c.h.bf16 %v191_v12 }
  0x1d   : > { %v207_v24 = vsub.f32 %v177_v4, %v195_v15  ;;  %v208_v25 = vsub.f32 %v178_v5, %v196_v16  ;;  %725 = vmatprep.mubr.msk.bf16.mxu0 %vm234_vm1, %v191_v12  ;;  %v201_v26 = vunpack.c.l.bf16 %v192_v17  ;;  %v202_v27 = vunpack.c.h.bf16 %v192_v17 }
  0x1e   : > { %v209_v28 = vsub.f32 %v179_v6, %v197_v18  ;;  %v210_v29 = vsub.f32 %v180_v8, %v198_v19  ;;  %v211_v30 = vsub.f32 %v181_v9, %v199_v20  ;;  %v212_v31 = vsub.f32 %v182_v10, %v200_v21 }
  0x1f   : > { %v219_v32 = vpack.c.bf16 %v208_v25, %v207_v24  ;;  %v193_v33 = vpack.c.bf16 %v186_v23, %v185_v22  ;;  %v213_v40 = vsub.f32 %v183_v13, %v201_v26  ;;  %v214_v41 = vsub.f32 %v184_v14, %v202_v27 }
  0x20   : > { %v220_v36 = vpack.c.bf16 %v210_v29, %v209_v28  ;;  %v221_v37 = vpack.c.bf16 %v212_v31, %v211_v30  ;;  %v194_v42 = vpack.c.bf16 %v188_v35, %v187_v34 }
  0x21   : > { %705 = vmatprep.mubr.msk.bf16.mxu1 %vm234_vm1, %v219_v32  ;;  %v203_v38 = vunpack.c.l.bf16 %v193_v33  ;;  %v204_v39 = vunpack.c.h.bf16 %v193_v33  ;;  %v222_v45 = vpack.c.bf16 %v214_v41, %v213_v40 }
  0x22   : > { %706 = vmatmul.mubr.msk.bf16.vlgmr.msra.gmra.mrb[0].mxu1 %vm234_vm1, %v220_v36  ;;  %v205_v46 = vunpack.c.l.bf16 %v194_v42  ;;  %v206_v47 = vunpack.c.h.bf16 %v194_v42 }
  0x23   : > { %709 = vmatprep.mubr.msk.bf16.mxu1 %vm234_vm1, %v221_v37  ;;  %v215_v43 = vsub.f32 %v185_v22, %v203_v38  ;;  %v216_v44 = vsub.f32 %v186_v23, %v204_v39 }
  0x24   : > { %726 = vmatmul.mubr.msk.bf16.gmra.mrb[4].mxu0 %vm234_vm1, %v192_v17  ;;  %v217_v49 = vsub.f32 %v187_v34, %v205_v46  ;;  %v218_v50 = vsub.f32 %v188_v35, %v206_v47 }
  0x25   : > { %729 = vmatprep.mubr.msk.bf16.mxu0 %vm234_vm1, %v193_v33  ;;  %v223_v48 = vpack.c.bf16 %v216_v44, %v215_v43 }
  0x26   : > { %v224_v51 = vpack.c.bf16 %v218_v50, %v217_v49 }
  0x2a   : > { %710 = vmatmul.mubr.msk.bf16.gmra.mrb[4].mxu1 %vm234_vm1, %v222_v45 }
  0x2b   : > { %713 = vmatprep.mubr.msk.bf16.mxu1 %vm234_vm1, %v223_v48 }
  0x2c   : > { %730 = vmatmul.mubr.msk.bf16.gmra.mrb[8].mxu0 %vm234_vm1, %v194_v42 }
  0x32   : > { %714 = vmatmul.mubr.msk.bf16.gmra.mrb[8].mxu1 %vm234_vm1, %v224_v51 }
  0xef   : > { %v723_v52 = vpop.f32.mrb[0].mxu0 }
  0xf0   : > { %v390_v53 = vpop.f32.mrb[1].mxu0 }
  0xf1   : > { %v724_v54 = vpop.f32.mrb[2].mxu0 }
  0xf2   : > { %v393_v55 = vpop.f32.mrb[3].mxu0 }
  0xf5   : > { %v707_v56 = vpop.f32.mrb[0].mxu1 }
  0xf6   : > { %v399_v57 = vadd.f32 %v723_v52, %v707_v56  ;;  %v291_v58 = vpop.f32.mrb[1].mxu1 }
  0xf7   : > { %v391_v59 = vadd.f32 %v390_v53, %v291_v58  ;;  %v708_v60 = vpop.f32.mrb[2].mxu1  ;;  %v727_v61 = vpop.f32.mrb[4].mxu0 }
  0xf8   : > { %440 = vst.msk [vmem:[#allocation2 + $0x10] sm:$0xff] %vm437_vm2, %v399_v57  ;;  %v402_v62 = vadd.f32 %v724_v54, %v708_v60  ;;  %v294_v63 = vpop.f32.mrb[3].mxu1  ;;  %v406_v0 = vpop.f32.mrb[5].mxu0 }
  0xf9   : > { %438 = vst.msk [vmem:[#allocation2] sm:$0xff] %vm437_vm2, %v391_v59  ;;  %v394_v2 = vadd.f32 %v393_v55, %v294_v63  ;;  %v728_v3 = vpop.f32.mrb[6].mxu0 }
  0xfa   : > { %441 = vst.msk [vmem:[#allocation2 + $0x18] sm:$0xff] %vm437_vm2, %v402_v62  ;;  %v409_v4 = vpop.f32.mrb[7].mxu0 }
  0xfb   : > { %439 = vst.msk [vmem:[#allocation2 + $0x8] sm:$0xff] %vm437_vm2, %v394_v2 }
  0xfd   : > { %v711_v5 = vpop.f32.mrb[4].mxu1 }
  0xfe   : > { %v415_v6 = vadd.f32 %v727_v61, %v711_v5  ;;  %v307_v7 = vpop.f32.mrb[5].mxu1 }
  0xff   : > { %v407_v8 = vadd.f32 %v406_v0, %v307_v7  ;;  %v712_v9 = vpop.f32.mrb[6].mxu1  ;;  %v731_v10 = vpop.f32.mrb[8].mxu0 }
 0x100   : > { %444 = vst.msk [vmem:[#allocation2 + $0x30] sm:$0xff] %vm437_vm2, %v415_v6  ;;  %v418_v11 = vadd.f32 %v728_v3, %v712_v9  ;;  %v310_v12 = vpop.f32.mrb[7].mxu1  ;;  %v422_v13 = vpop.f32.mrb[9].mxu0 }
 0x101   : > { %442 = vst.msk [vmem:[#allocation2 + $0x20] sm:$0xff] %vm437_vm2, %v407_v8  ;;  %v410_v14 = vadd.f32 %v409_v4, %v310_v12  ;;  %v732_v15 = vpop.f32.mrb[10].mxu0 }
 0x102   : > { %445 = vst.msk [vmem:[#allocation2 + $0x38] sm:$0xff] %vm437_vm2, %v418_v11  ;;  %v425_v16 = vpop.f32.mrb[11].mxu0 }
 0x103   : > { %443 = vst.msk [vmem:[#allocation2 + $0x28] sm:$0xff] %vm437_vm2, %v410_v14 }
 0x105   : > { %v715_v17 = vpop.f32.mrb[8].mxu1 }
 0x106   : > { %v431_v18 = vadd.f32 %v731_v10, %v715_v17  ;;  %v323_v19 = vpop.f32.mrb[9].mxu1 }
 0x107   : > { %v423_v20 = vadd.f32 %v422_v13, %v323_v19  ;;  %v716_v21 = vpop.f32.mrb[10].mxu1 }
 0x108   : > { %448 = vst.msk [vmem:[#allocation2 + $0x50] sm:$0xff] %vm437_vm2, %v431_v18  ;;  %v434_v22 = vadd.f32 %v732_v15, %v716_v21  ;;  %v326_v23 = vpop.f32.mrb[11].mxu1 }
 0x109   : > { %446 = vst.msk [vmem:[#allocation2 + $0x40] sm:$0xff] %vm437_vm2, %v423_v20  ;;  %v426_v24 = vadd.f32 %v425_v16, %v326_v23 }
 0x10a   : > { %449 = vst.msk [vmem:[#allocation2 + $0x58] sm:$0xff] %vm437_vm2, %v434_v22 }
 0x10b   : > { %447 = vst.msk [vmem:[#allocation2 + $0x48] sm:$0xff] %vm437_vm2, %v426_v24 }
 0x10c LB: >> { %v889_v25 = vmov 0.0   ;;  %s456_s17 = smul.u32 24, %s887_s11  ;;  %vm890_vm3 = vmmov 0   ;;  %vm475_vm4 = vcmask 1043456   ;;  %vm471_vm5 = vcmask 195584   ;;  %s672_s20 = sshll.u32 %s887_s11, 3  ;;  %s887_s11 = sphi %s1021_s11, %s455_s11  }
 0x10d   : >> { %741 = vmatprep.subr.bf16.mxu0 %v889_v25  ;;  %733 = vmatprep.subr.bf16.mxu1 %v889_v25  ;;  %s563_s24 = scalar_lea.vmem %s164_s10, %s672_s20 [#allocation3]  ;;  %s455_s11 = sadd.s32 1, %s887_s11  }
 0x10e   : >> { %745 = vmatprep.mubr.msk.bf16.mxu0 %vm890_vm3, %v889_v25  ;;  %737 = vmatprep.mubr.msk.bf16.mxu1 %vm890_vm3, %v889_v25  ;;  %s457_s19 = scalar_lea.vmem [#allocation2], %s456_s17  ;;  %p452_p11 = scmp.ge.s32.totalorder %s455_s11, 4  }
 0x10f   : > { %s678_s25 = sshll.u32 (%p452_p11), %s935_s16, 9  ;;  %s579_s4 = sshll.u32 (%p452_p11), %s164_s10, 4  ;;  %s1046_s4 = int_to_ptr.vmem [resolvable:$true] %s579_s4 }
 0x110   : > { %s1042_s30 = scalar_lea.hbm (%p452_p11), %s1094_s3, %s678_s25  ;;  %s1050_s5 = scalar_lea.sflag (%p452_p11), [#allocation4], %s162_s26 }
 0x111   : > { %s817_s6 = scalar_lea.vmem (%p452_p11), %s1046_s4, 512  ;;  %s891_s16 = smov (%p452_p11), [#allocation3]  }
 0x112   : >> { %v458_v26 = vld [vmem:[%s457_s19] sm:$0xff]  ;;  %v459_v27 = vld [vmem:[%s457_s19 + $0x8] sm:$0xff]  ;;  %v460_v28 = vld [vmem:[%s457_s19 + $0x10] sm:$0xff]  ;;  %p818_p12 = scmp.ne.s32.totalorder (%p452_p11), %s1046_s4, %s817_s6  ;;  %s821_s7 = sshll.u32 (%p452_p11), %s891_s16, 4  ;;  %s822_s7 = int_to_ptr.vmem [resolvable:$false] %s821_s7 }
 0x113   : >> { %v461_v29 = vpack.c.bf16 %v459_v27, %v458_v26  ;;  %v462_v30 = vpack.c.bf16 %v460_v28, %v460_v28  ;;  %s823_s8 = scalar_lea.vmem (%p452_p11), %s822_s7, 1024  ;;  %p824_p1 = scmp.lt.s32.totalorder (%p452_p11), %s1046_s4, %s822_s7 }
 0x114   : > { %p819_p13 = pnand (%p452_p11), %p818_p12, %p952_p5  ;;  %p825_p2 = scmp.lt.s32.totalorder (%p452_p11), %s823_s8, %s817_s6 }
 0x115   : >> { %742 = vmatpush3.bf16.msra.mxu0 %v461_v29  ;;  %v463_v31 = vunpack.c.l.bf16 %v461_v29  ;;  %v464_v32 = vunpack.c.h.bf16 %v461_v29  ;;  %v465_v33 = vunpack.c.l.bf16 %v462_v30  ;;  %v520_v34 = vsel %vm475_vm4, %v462_v30, 0 }
 0x116   : >> { %743 = vmatprep.subr.bf16.mxu0 %v889_v25  ;;  %p820_p0 = pneg (%p452_p11), %p819_p13  ;;  %p826_p3 = por (%p452_p11), %p825_p2, %p824_p1 }
 0x117   : >> { %v466_v35 = vsub.f32 %v458_v26, %v463_v31  ;;  %v467_v36 = vsub.f32 %v459_v27, %v464_v32  ;;  %v468_v37 = vsub.f32 %v460_v28, %v465_v33 }
 0x118   : > { %p827_p4 = pnand (%p452_p11), %p826_p3, %p820_p0 }
 0x119   : >> { %v469_v38 = vpack.c.bf16 %v467_v36, %v466_v35  ;;  %744 = vmatpush3.bf16.msra.mxu0 %v520_v34  ;;  %v470_v39 = vpack.c.bf16 %v468_v37, %v468_v37 }
 0x11b   : >> { %734 = vmatpush3.bf16.msra.mxu1 %v469_v38  ;;  %v477_v40 = vsel %vm475_vm4, %v470_v39, 0 }
 0x11c   : >> { %735 = vmatprep.subr.bf16.mxu1 %v889_v25  ;;  %746 = vmatmul.mubr.msk.bf16.vlgmr.msra.gmra.mrb[0].mxu0 %vm471_vm5, %v973_v1 }
 0x11f   : >> { %736 = vmatpush3.bf16.msra.mxu1 %v477_v40 }
 0x122   : >> { %738 = vmatmul.mubr.msk.bf16.vlgmr.msra.gmra.mrb[0].mxu1 %vm471_vm5, %v973_v1 }
 0x1ef   : >> { %v556_v41 = vpop.f32.mrb[0].mxu0 }
 0x1f0   : >> { %v747_v42 = vpop.f32.mrb[1].mxu0 }
 0x1f1   : >> { %v559_v43 = vpop.f32.mrb[2].mxu0 }
 0x1f2   : >> { %v748_v44 = vpop.f32.mrb[3].mxu0  ;;  %454 = sbr.rel (!%p452_p11) target bundleno = 268 (0x10c), region = 76 }
 0x1f5   : >> { %v513_v45 = vpop.f32.mrb[0].mxu1 }
 0x1f6   : >> { %v557_v46 = vadd.f32 %v556_v41, %v513_v45  ;;  %v739_v47 = vpop.f32.mrb[1].mxu1 }
 0x1f7   : >> { %v516_v48 = vpop.f32.mrb[2].mxu1 }
 0x1f8   : >> { %564 = vst.msk [vmem:[%s563_s24] sm:$0xff] %vm437_vm2, %v557_v46  ;;  %v740_v49 = vpop.f32.mrb[3].mxu1 }
 0x1f9   : > { %830 = shalt.err (!%p827_p4)
}
 0x1fa   : > { %s831_s26 = scalar_lea.hbm %s1042_s30, 512  ;;  %s835_s10 = scalar_lea.hbm %s1094_s3, 1024 }
 0x1fb   : > { %p832_p7 = scmp.ne.s32.totalorder %s1042_s30, %s831_s26  ;;  %p836_p10 = scmp.lt.u32.totalorder %s1042_s30, %s1094_s3 }
 0x1fc   : > { %p837_p11 = scmp.lt.u32.totalorder %s835_s10, %s831_s26  ;;  %p839_p13 = scmp.lt.u32.totalorder %s831_s26, %s1042_s30 }
 0x1fd   : > { %p833_p8 = pnand %p832_p7, %p952_p5 }
 0x1fe   : > { %p838_p12 = por %p837_p11, %p836_p10 }
 0x1ff   : > { %p834_p9 = pneg %p833_p8 }
 0x200   : > { %p840_p0 = por %p839_p13, %p838_p12 }
 0x202   : > { %p841_p1 = pnand %p840_p0, %p834_p9 }
 0x204   : > { %844 = shalt.err (!%p841_p1)
}
 0x205   : > { %s892_s19 = smov 128   ;;  %s893_s20 = smov 8  }
 0x206   : > { %764 = dma.vmem_to_hbm [thread:$0]  (%p952_p5), %s1046_s4, 512, %s1042_s30, %s1050_s5, %s892_s19, %s892_s19, %s893_s20  }
 0x207 PF: > { %p770_p2 = scmp.ge.s32.totalorder %s883_s15, 2  ;;  %s594_s24 = sand.u32 1, %s871_s12  }
 0x208   : > { %s595_s25 = scalar_lea.sflag [#allocation4], %s594_s24 }
 0x209   : > { %p767_p3 = pnand %p770_p2, %p956_p6 }
 0x20b   : > { %866 = dma.done.wait (!%p767_p3), %s595_s25, 512  }
 0x20c   : > { %868 = vsyncadd (!%p767_p3), %s595_s25, 4294966784  ;;  %p13_p4 = scmp.ge.s32.totalorder %s939_s18, 4   ;;  %s1097_s12 = smov %s875_s13 }
 0x20d   : > { %s1098_s13 = smov %s879_s14  ;;  %s1099_s14 = smov %s950_s21 }
 0x20e   : > { %s1100_s15 = smov %s939_s18  ;;  %15 = sbr.rel (!%p13_p4) target bundleno = 3 (0x3), region = 87 }
 0x215   :  { %600 = vsyncpa [#allocation4], 1 }
 0x216   :  { %602 = vsyncpa [#allocation4 + $0x1], 1 }

</bundles_post_ra>
